<compile_context>
chip_gen: v5e
topology: v5e:2x2
jax: 0.10.0
libtpu: 0.0.40
codegen_flags: <defaults>
</compile_context>

<pallas_src>
import functools

import jax
import jax.numpy as jnp
from jax.experimental import pallas as pl
from jax.experimental.pallas import tpu as pltpu


def _round_up(v, m):
    return ((v + m - 1) // m) * m


def _gem_kernel(p_ref, x_ref, o_ref, acc_ref, *, eps, hw_true, n_pad_hw, static_p):
    """Accumulate clamp(x,eps)^p over one (1, c_tile, hw_tile) tile.

    p_ref  : (1,)                      SMEM  learnable exponent (ignored if static_p)
    x_ref  : (1, c_tile, hw_tile)      VMEM  input tile
    o_ref  : (1, c_tile, 1)            VMEM  output tile (stored on last k step only)
    acc_ref: (1, c_tile, 1 or 128)     VMEM  f32 partial-sum accumulator
    """
    k = pl.program_id(2)

    @pl.when(k == 0)
    def _init():
        acc_ref[...] = jnp.zeros_like(acc_ref)

    x = x_ref[...].astype(jnp.float32)            # (1, c_tile, hw_tile)
    xc = jnp.maximum(x, jnp.float32(eps))         # clamp(min=eps): positive base

    pv = None
    static_int_p = (
        static_p is not None
        and float(static_p) == float(int(round(float(static_p))))
        and 1 <= int(round(float(static_p))) <= 8
    )
    if static_int_p:
        # VPU multiply chain -- keeps the single EUP slot free (HBM-roofline path).
        xp = xc
        for _ in range(int(round(float(static_p))) - 1):
            xp = xp * xc
    elif static_p is not None:
        pv = jnp.float32(static_p)
        xp = jnp.power(xc, pv)
    else:
        pv = p_ref[0].astype(jnp.float32)         # traced learnable exponent
        xp = jnp.power(xc, pv)                    # exp(p*log(x)) on the EUP

    hw_tile = xp.shape[-1]
    if acc_ref.shape[-1] != 1:
        # Lane-resident accumulation: pure vreg adds over aligned 128-lane slices;
        # the cross-lane (XLU) reduce is deferred to the finalize step.
        assert hw_tile % 128 == 0
        part = xp[:, :, 0:128]
        for j in range(1, hw_tile // 128):
            part = part + xp[:, :, j * 128:(j + 1) * 128]
        acc_ref[...] += part
    else:
        acc_ref[...] += jnp.sum(xp, axis=-1, keepdims=True)

    @pl.when(k == pl.num_programs(2) - 1)
    def _finalize():
        total = acc_ref[...]
        if acc_ref.shape[-1] != 1:
            total = jnp.sum(total, axis=-1, keepdims=True)        # (1, c_tile, 1)
        if n_pad_hw:
            # Zero-padded spatial lanes clamp to exactly eps -> each contributed
            # eps**p; subtract the exact constant once instead of masking per step.
            if static_p is None:
                pad_term = jnp.power(jnp.float32(eps), pv)
            else:
                pad_term = jnp.float32(float(eps) ** float(static_p))
            total = total - jnp.float32(n_pad_hw) * pad_term
        pooled = total * jnp.float32(1.0 / hw_true)               # mean over true HW
        if static_p is None:
            root = jnp.power(pooled, 1.0 / pv)
        else:
            root = jnp.power(pooled, jnp.float32(1.0 / float(static_p)))
        o_ref[...] = root.astype(o_ref.dtype)


def gem_pallas(x, p=None, eps=1e-6, *, static_p=None, target_block_bytes=8 << 20):
    """Generalized-mean pool over all trailing spatial dims.

    x: (N, C, *spatial); p: (1,) traced exponent (or pass static_p for a
    compile-time exponent / VPU fast path). Returns (N, C, 1, ..., 1).
    """
    if x.ndim < 3:
        raise ValueError("expected input of shape (N, C, *spatial)")
    N, C = int(x.shape[0]), int(x.shape[1])
    spatial = x.shape[2:]
    HW = 1
    for s in spatial:
        HW *= int(s)

    itemsize = jnp.dtype(x.dtype).itemsize
    # Per-step element budget: (a) requested DMA block size (dtype-aware) and
    # (b) a VMEM-safety cap leaving room for double-buffered input blocks plus
    # f32 elementwise temporaries (v7x has only 64 MiB physical VMEM).
    total_elem_cap = max(128, min(target_block_bytes // itemsize,
                                  (40 << 20) // (2 * itemsize + 12)))

    # ---- channel tiling: prefer no padding / full-extent blocks ----
    if C <= 128:
        c_tile, c_pad = C, C
        # v7x megacore: on single-image calls split C so both TensorCores get work.
        if N == 1 and C >= 16 and C % 16 == 0:
            c_tile = C // 2
    elif C * HW <= total_elem_cap:
        c_tile, c_pad = C, C                      # whole (C, HW) slab in one block
    elif C % 128 == 0:
        c_tile, c_pad = 128, C                    # parallel C-blocks, no pad
    elif total_elem_cap // C >= 128:
        c_tile, c_pad = C, C                      # full-extent C (exempt), tile HW only
    else:
        c_tile, c_pad = 128, _round_up(C, 128)    # rare: huge non-128-multiple C

    # ---- spatial tiling: full-extent HW when it fits (no pad, no mask, 1 step) ----
    per_c_cap = max(1, total_elem_cap // c_tile)
    if HW <= 128 or HW <= per_c_cap:
        hw_tile, hw_pad = HW, HW
    else:
        hw_tile = min(_round_up(HW, 128), max(128, (per_c_cap // 128) * 128))
        hw_pad = _round_up(HW, hw_tile)
    n_k = hw_pad // hw_tile

    # Lane-resident (1, c_tile, 128) accumulator only when the reduction is
    # multi-step (otherwise the single cross-lane reduce happens once anyway).
    lane_acc = n_k > 1 and hw_tile % 128 == 0 and (hw_tile // 128) <= 256
    acc_lanes = 128 if lane_acc else 1

    x3 = x.reshape(N, C, HW)
    if c_pad != C or hw_pad != HW:
        # Zero-pad; padded entries clamp to exactly eps inside the kernel and the
        # spatial-pad contribution is subtracted once in the finalize step.
        x3 = jnp.pad(x3, ((0, 0), (0, c_pad - C), (0, hw_pad - HW)))

    if p is None:
        if static_p is None:
            raise ValueError("either p (array) or static_p must be provided")
        p_arr = jnp.full((1,), float(static_p), jnp.float32)
    else:
        p_arr = jnp.asarray(p, jnp.float32).reshape((1,))

    grid = (N, c_pad // c_tile, n_k)
    block_in = c_tile * hw_tile * itemsize
    block_f32 = c_tile * hw_tile * 4
    vmem_limit = int(min(56 << 20, max(32 << 20, 2 * block_in + 4 * block_f32 + (2 << 20))))

    out = pl.pallas_call(
        functools.partial(
            _gem_kernel,
            eps=float(eps),
            hw_true=HW,
            n_pad_hw=hw_pad - HW,
            static_p=static_p,
        ),
        out_shape=jax.ShapeDtypeStruct((N, c_pad, 1), x.dtype),
        grid=grid,
        in_specs=[
            pl.BlockSpec(memory_space=pltpu.MemorySpace.SMEM),               # p scalar
            pl.BlockSpec((1, c_tile, hw_tile), lambda n, c, k: (n, c, k)),   # x tile
        ],
        out_specs=pl.BlockSpec((1, c_tile, 1), lambda n, c, k: (n, c, 0)),
        scratch_shapes=[pltpu.VMEM((1, c_tile, acc_lanes), jnp.float32)],
        compiler_params=pltpu.CompilerParams(
            dimension_semantics=("parallel", "parallel", "arbitrary"),
            vmem_limit_bytes=vmem_limit,
        ),
    )(p_arr, x3)

    out = out[:, :C, 0]                                    # (N, C)
    return out.reshape((N, C) + (1,) * len(spatial))       # (N, C, 1, ..., 1)


class GeM:
    """JAX/Pallas analogue of the PyTorch GeM module (forward only)."""

    def __init__(self, p=3.0, eps=1e-6, dim=2):
        self.p = jnp.ones((1,), jnp.float32) * p   # learnable exponent (traced)
        self.eps = eps
        self.dim = dim

    def __call__(self, x):
        if x.ndim != self.dim + 2:
            raise ValueError(f"expected {self.dim + 2}-D input, got {x.ndim}-D")
        return gem_pallas(x, self.p, eps=self.eps)


def gem_ref(x, p, eps=1e-6):
    """Pure-JAX reference mirroring the PyTorch gem_* functions."""
    spatial_axes = tuple(range(2, x.ndim))
    xp = jnp.power(jnp.maximum(x, eps), p[0])
    pooled = jnp.mean(xp, axis=spatial_axes, keepdims=True)
    return jnp.power(pooled, 1.0 / p[0])


if __name__ == "__main__":
    eps = 1e-6
    key = jax.random.PRNGKey(0)
    k1, k2, k3, k4 = jax.random.split(key, 4)
    p3 = jnp.ones((1,), jnp.float32) * 3.0

    # --- dim=2 (module default), traced learnable p ---
    x2 = jax.random.uniform(k1, (2, 4, 16, 16), dtype=jnp.float32)
    gem2 = GeM(p=3.0, eps=eps, dim=2)
    out2 = jax.block_until_ready(gem2(x2))
    ref2 = gem_ref(x2, p3, eps=eps)
    assert out2.shape == (2, 4, 1, 1), out2.shape
    assert jnp.allclose(out2, ref2, atol=1e-5, rtol=1e-5), (
        f"2d max abs err {jnp.max(jnp.abs(out2 - ref2))}")

    # --- dim=1 and dim=3 via the same generic kernel ---
    x1 = jax.random.uniform(k2, (2, 4, 100), dtype=jnp.float32)
    out1 = jax.block_until_ready(gem_pallas(x1, p3, eps=eps))
    assert jnp.allclose(out1, gem_ref(x1, p3, eps=eps), atol=1e-5, rtol=1e-5)

    x3d = jax.random.uniform(k3, (2, 4, 4, 8, 8), dtype=jnp.float32)
    out3 = jax.block_until_ready(gem_pallas(x3d, p3, eps=eps))
    assert jnp.allclose(out3, gem_ref(x3d, p3, eps=eps), atol=1e-5, rtol=1e-5)

    # --- forced multi-step tiled-HW path: exercises spatial padding, the eps**p
    #     finalize correction, the lane-resident accumulator and the v7x C-split ---
    p25 = jnp.array([2.5], jnp.float32)
    x4 = jax.random.uniform(k4, (1, 16, 20, 20), dtype=jnp.float32)
    out4 = jax.block_until_ready(
        gem_pallas(x4, p25, eps=eps, target_block_bytes=8 * 1024))
    assert jnp.allclose(out4, gem_ref(x4, p25, eps=eps), atol=1e-5, rtol=1e-5), (
        f"tiled max abs err {jnp.max(jnp.abs(out4 - gem_ref(x4, p25, eps=eps)))}")

    # --- static integer p fast path (VPU multiply chain instead of exp/log) ---
    out2s = jax.block_until_ready(gem_pallas(x2, eps=eps, static_p=3))
    assert jnp.allclose(out2s, ref2, atol=1e-5, rtol=1e-4)

    # --- bf16 input (dtype-aware tiling, f32 internal accumulation) ---
    x2b = x2.astype(jnp.bfloat16)
    out2b = jax.block_until_ready(gem_pallas(x2b, p3, eps=eps))
    ref2b = gem_ref(x2b.astype(jnp.float32), p3, eps=eps)
    assert jnp.allclose(out2b.astype(jnp.float32), ref2b, atol=1e-2, rtol=1e-2)

    print("KERNEL_OK")
</pallas_src>

<mosaic_0001>
module attributes {stable_mosaic.version = 11 : i64} {
  func.func @_gem_kernel(%arg0: i32, %arg1: i32, %arg2: i32, %arg3: memref<1xf32, #tpu.memory_space<smem>>, %arg4: memref<1x4x256xf32, #tpu.memory_space<vmem>>, %arg5: memref<1x4x1xf32, #tpu.memory_space<vmem>>, %arg6: memref<1x4x1xf32, #tpu.memory_space<vmem>>) attributes {dimension_semantics = [#tpu.dimension_semantics<parallel>, #tpu.dimension_semantics<parallel>, #tpu.dimension_semantics<arbitrary>], iteration_bounds = array<i64: 2, 1, 1>, scalar_prefetch = 0 : i64, scratch_operands = 1 : i64, tpu.core_type = #tpu.core_type<tc>, window_params = [{transform_indices = @transform_0, window_bounds = array<i64: 1>}, {transform_indices = @transform_1, window_bounds = array<i64: 1, 4, 256>}, {transform_indices = @transform_2, window_bounds = array<i64: 1, 4, 1>}]} {
    %c0_i32 = arith.constant 0 : i32
    %0 = arith.cmpi eq, %arg2, %c0_i32 : i32
    %1 = arith.extui %0 : i1 to i32
    %c0_i32_0 = arith.constant 0 : i32
    %2 = arith.cmpi ne, %1, %c0_i32_0 : i32
    scf.if %2 {
      %cst_13 = arith.constant 0.000000e+00 : f32
      %17 = vector.broadcast %cst_13 : f32 to vector<1x4x1xf32>
      %c0_14 = arith.constant 0 : index
      %c0_15 = arith.constant 0 : index
      %c0_16 = arith.constant 0 : index
      %18 = vector.load %arg6[%c0_14, %c0_15, %c0_16] : memref<1x4x1xf32, #tpu.memory_space<vmem>>, vector<1x4x1xf32>
      tpu.vector_store %arg6[%c0_14, %c0_15, %c0_16], %17 {strides = array<i32>} : memref<1x4x1xf32, #tpu.memory_space<vmem>>, vector<1x4x1xf32>,
    } else {
    }
    %c0 = arith.constant 0 : index
    %c0_1 = arith.constant 0 : index
    %c0_2 = arith.constant 0 : index
    %3 = vector.load %arg4[%c0, %c0_1, %c0_2] : memref<1x4x256xf32, #tpu.memory_space<vmem>>, vector<1x4x256xf32>
    %cst = arith.constant 9.99999997E-7 : f32
    %4 = vector.broadcast %cst : f32 to vector<1x4x256xf32>
    %5 = arith.maximumf %3, %4 : vector<1x4x256xf32>
    %c0_3 = arith.constant 0 : index
    %6 = memref.load %arg3[%c0_3] : memref<1xf32, #tpu.memory_space<smem>>
    %7 = vector.broadcast %6 : f32 to vector<1x4x256xf32>
    %8 = math.powf %5, %7 : vector<1x4x256xf32>
    %c0_4 = arith.constant 0 : index
    %c0_5 = arith.constant 0 : index
    %c0_6 = arith.constant 0 : index
    %9 = vector.load %arg6[%c0_4, %c0_5, %c0_6] : memref<1x4x1xf32, #tpu.memory_space<vmem>>, vector<1x4x1xf32>
    %cst_7 = arith.constant dense<0.000000e+00> : vector<1x4xf32>
    %10 = vector.multi_reduction <add>, %8, %cst_7 [2] : vector<1x4x256xf32> to vector<1x4xf32>
    %11 = vector.shape_cast %10 : vector<1x4xf32> to vector<1x4x1xf32>
    %12 = arith.addf %9, %11 : vector<1x4x1xf32>
    %c0_8 = arith.constant 0 : index
    %c0_9 = arith.constant 0 : index
    %c0_10 = arith.constant 0 : index
    %13 = vector.load %arg6[%c0_8, %c0_9, %c0_10] : memref<1x4x1xf32, #tpu.memory_space<vmem>>, vector<1x4x1xf32>
    tpu.vector_store %arg6[%c0_8, %c0_9, %c0_10], %12 {strides = array<i32>} : memref<1x4x1xf32, #tpu.memory_space<vmem>>, vector<1x4x1xf32>,
    %c0_i32_11 = arith.constant 0 : i32
    %14 = arith.cmpi eq, %arg2, %c0_i32_11 : i32
    %15 = arith.extui %14 : i1 to i32
    %c0_i32_12 = arith.constant 0 : i32
    %16 = arith.cmpi ne, %15, %c0_i32_12 : i32
    scf.if %16 {
      %c0_13 = arith.constant 0 : index
      %c0_14 = arith.constant 0 : index
      %c0_15 = arith.constant 0 : index
      %17 = vector.load %arg6[%c0_13, %c0_14, %c0_15] : memref<1x4x1xf32, #tpu.memory_space<vmem>>, vector<1x4x1xf32>
      %cst_16 = arith.constant 3.906250e-03 : f32
      %18 = vector.broadcast %cst_16 : f32 to vector<1x4x1xf32>
      %19 = arith.mulf %17, %18 : vector<1x4x1xf32>
      %cst_17 = arith.constant 1.000000e+00 : f32
      %20 = arith.divf %cst_17, %6 : f32
      %21 = vector.broadcast %20 : f32 to vector<1x4x1xf32>
      %22 = math.powf %19, %21 : vector<1x4x1xf32>
      %c0_18 = arith.constant 0 : index
      %c0_19 = arith.constant 0 : index
      %c0_20 = arith.constant 0 : index
      %23 = vector.load %arg5[%c0_18, %c0_19, %c0_20] : memref<1x4x1xf32, #tpu.memory_space<vmem>>, vector<1x4x1xf32>
      tpu.vector_store %arg5[%c0_18, %c0_19, %c0_20], %22 {strides = array<i32>} : memref<1x4x1xf32, #tpu.memory_space<vmem>>, vector<1x4x1xf32>,
    } else {
    }
    return
  }
  func.func @transform_0(%arg0: i32, %arg1: i32, %arg2: i32) -> i32 {
    %c0_i32 = arith.constant 0 : i32
    %c0_i32_0 = arith.constant 0 : i32
    return %c0_i32 : i32
  }
  func.func @transform_1(%arg0: i32, %arg1: i32, %arg2: i32) -> (i32, i32, i32) {
    %c0_i32 = arith.constant 0 : i32
    return %arg0, %arg1, %arg2 : i32, i32, i32
  }
  func.func @transform_2(%arg0: i32, %arg1: i32, %arg2: i32) -> (i32, i32, i32) {
    %c0_i32 = arith.constant 0 : i32
    %c0_i32_0 = arith.constant 0 : i32
    return %arg0, %arg1, %c0_i32 : i32, i32, i32
  }
}

</mosaic_0001>

<bundles_post_ra>
// kernel: tpu_custom_call.1
= control target key start
LH: loop header
LB: loop body
LE: loop exit
PB: predicated region body
PF: predicated region fallthrough
CT: control target
= control target key end

     0   :  { %s999_s0 = inlined_call_operand.<no memory space> [shape: f32[1], index: 0, kind: input, shape index: {}]   ;;  %s1000_s1 = inlined_call_operand.hbm [shape: f32[2,4,256], index: 1, kind: input, shape index: {}]   ;;  %s1001_s2 = inlined_call_operand.vmem [shape: f32[2,4,1], index: 2, kind: output, shape index: {}]  }
   0x1   :  { %7 = sst [smem:[#allocation3]] %s999_s0 }
   0x2   :  { %8 = vsyncpa [#allocation5], 0 }
   0x3   :  { %10 = vsyncpa [#allocation5 + $0x1], 0  ;;  %s725_s11 = smov 0   ;;  %s727_s12 = smov 0  }
   0x4   :  { %s729_s13 = smov 0   ;;  %s731_s14 = smov 0  }
   0x5   :  { %s733_s15 = smov 0   ;;  %s735_s16 = smov 0  }
   0x6 LB: > { %s341_s0 = sadd.s32 4294967295, %s702_s16   ;;  %s35_s17 = sadd.s32 1, %s698_s15  ;;  %s702_s16 = sphi %s735_s16, %s16_s16   ;;  %s698_s15 = sphi %s733_s15, %s1025_s15   ;;  %s694_s14 = sphi %s731_s14, %s1024_s14   ;;  %s690_s13 = sphi %s729_s13, %s1023_s13   ;;  %s686_s12 = sphi %s727_s12, %s1022_s12   ;;  %s682_s11 = sphi %s725_s11, %s1021_s11  }
   0x7   : > { %p37_p0 = scmp.ge.s32.totalorder %s35_s17, 2  ;;  %s67_s18 = sadd.s32 1, %s690_s13 }
   0x8   : > { %p74_p1 = scmp.ne.s32.totalorder %s690_s13, %s686_s12  ;;  %p75_p2 = scmp.eq.s32.totalorder %s702_s16, 0 }
   0x9   : > { %s1027_s17 = smov (%p37_p0, %s35_s17), 0  ;;  %p80_p4 = scmp.ne.s32.totalorder %s686_s12, %s682_s11 }
   0xa   : > { %p761_p3 = por %p75_p2, %p74_p1  ;;  %s60_s20 = ssub.s32 %s698_s15, %s1027_s17 }
   0xb   : > { %p81_p5 = scmp.eq.s32.totalorder %s341_s0, 0  ;;  %p65_p6 = scmp.eq.s32.totalorder %s60_s20, 0 }
   0xc   : > { %p564_p8 = scmp.lt.s32.totalorder %s702_s16, 2  ;;  %s135_s23 = sand.u32 1, %s690_s13  }
   0xd   : > { %p768_p7 = por %p81_p5, %p80_p4  ;;  %s353_s24 = sshll.u32 %s698_s15, 3 }
   0xe   : > { %s774_s22 = scalar_select %p65_p6, %s690_s13, %s67_s18  }
   0xf   : > { %s345_s25 = sshll.u32 %s135_s23, 3  ;;  %s148_s28 = scalar_lea.hbm %s1000_s1, %s353_s24 }
  0x10   : > { %s150_s29 = sshll.u32 %s148_s28, 4  ;;  %s139_s30 = scalar_lea.vmem [#allocation4], %s345_s25  ;;  %s151_s29 = int_to_ptr.hbm [resolvable:$true] %s150_s29 }
  0x11   : > { %s152_s3 = sshll.u32 %s139_s30, 4  ;;  %p561_p9 = pnand %p564_p8, %p761_p3  ;;  %s153_s3 = int_to_ptr.vmem [resolvable:$true] %s152_s3 }
  0x12   : > { %p348_p10 = scmp.ge.s32.totalorder %s702_s16, 1  ;;  %p157_p11 = scmp.lt.s32.totalorder %s702_s16, 3 }
  0x13   : > { %s136_s4 = scalar_lea.sflag [#allocation5], %s135_s23 }
  0x14   : > { %563 = dma.hbm_to_vmem [thread:$0]  (!%p561_p9), %s151_s29, 128, %s153_s3, %s136_s4  }
  0x15   : > { %p158_p12 = pnand %p348_p10, %p157_p11 }
  0x16   : > { %s163_s5 = sand.u32 (!%p158_p12), 1, %s686_s12  }
  0x17   : > { %161 = sbr.rel (%p158_p12) target bundleno = 296 (0x128), region = 28  ;;  %s349_s6 = sshll.u32 (!%p158_p12), %s163_s5, 3 }
  0x18   : > { %s164_s7 = scalar_lea.sflag (!%p158_p12), [#allocation5], %s163_s5  ;;  %s167_s8 = scalar_lea.vmem (!%p158_p12), [#allocation4], %s349_s6 }
  0x1c   : > { %677 = dma.done.wait (%p768_p7), %s164_s7, 128  }
  0x1d   : > { %679 = vsyncadd (%p768_p7), %s164_s7, 4294967168  ;;  %v205_v0 = vld [vmem:[%s167_s8] sm:$0xff]  ;;  %s207_s9 = sld [smem:[#allocation3]]  ;;  %vm1002_vm12 = vcmask 3072   ;;  %v704_v49 = vmov 0.0   ;;  %v705_v52 = vmov 2139095040  }
  0x1e   : > { %v790_v1 = vmax.f32 %v205_v0, 1e-06  ;;  %204 = vst.msk [vmem:[#allocation2] sm:$0xf] %vm1002_vm12, %v704_v49  ;;  %v706_v59 = vmov 0   ;;  %p192_p13 = scmp.lt.s32.totalorder %s694_s14, 1 }
  0x20   : > { %v793_v2 = vand.u32 2147483647, %v790_v1  ;;  %vm422_vm10 = vcmp.eq.f32.partialorder %v790_v1, 0  ;;  %vm421_vm15 = vcmp.lt.f32.partialorder %v790_v1, 0  ;;  %s1029_s14 = smov (!%p192_p13, %s694_s14), 1 }
  0x21   : > { %s350_s11 = sshll.u32 %s1029_s14, 2 }
  0x22   : > { %v360_v3 = vand.u32 8388607, %v793_v2  ;;  %v356_v10 = vand.u32 2139095040, %v793_v2  ;;  %vm394_vm2 = vweird.f32 %v793_v2  ;;  %vm393_vm3 = vcmp.lt.f32.partialorder %v793_v2, 0.0  ;;  %s198_s14 = scalar_lea.vmem %s1001_s2, %s350_s11 }
  0x23   : > { %v798_v22 = vstv %s207_s9  ;;  %vm392_vm6 = vcmp.eq.f32.partialorder %v793_v2, 0.0  ;;  %vm391_vm7 = vcmp.eq.f32.partialorder %v793_v2, 1.0  ;;  %vm425_vm11 = vcmp.gt.f32.partialorder %v793_v2, 1065353216 }
  0x24   : > { %v361_v4 = vor.u32 8388608, %v360_v3  ;;  %v357_v14 = vshrl.u32 %v356_v10, 23  ;;  %v801_v28 = vand.u32 2147483647, %v798_v22  ;;  %v407_v32 = vceil.f32 %v798_v22 }
  0x25   : > { %v408_v33 = vfloor.f32 %v798_v22  ;;  %vm406_vm1 = vcmp.lt.s32.totalorder %v798_v22, 0  ;;  %vm405_vm8 = vcmp.lt.f32.partialorder %v798_v22, 0  ;;  %616 = vrcp.f32 %v798_v22 }
  0x26   : > { %v363_v5 = vand.u32 8388607, %v361_v4  ;;  %v453_v19 = vadd.s32 4294967169, %v357_v14  ;;  %v414_v35 = vfloor.f32 %v801_v28  ;;  %vm402_vm4 = vcmp.eq.f32.partialorder %v801_v28, 2139095040 }
  0x27   : > { %v409_v38 = vsel %vm406_vm1, %v407_v32, %v408_v33  ;;  %vm840_vm1 = vmxor %vm405_vm8, %vm425_vm11  ;;  %v441_v53 = vsel %vm405_vm8, 0, %v705_v52  ;;  %vm424_vm11 = vcmp.lt.s32.totalorder %v790_v1, 0  ;;  %v243_v58 = vand.u32 2147483648, %v798_v22 }
  0x28   : > { %v364_v6 = vor.u32 1065353216, %v363_v5  ;;  %v368_v25 = vadd.s32 1, %v453_v19  ;;  %v415_v40 = vcvt.f32.s32 %v414_v35  ;;  %vm410_vm5 = vcmp.ne.f32.partialorder %v798_v22, %v409_v38 }
  0x29   : > { %vm818_vm9 = vmor %vm410_vm5, %vm402_vm4  ;;  %v442_v56 = vxor.u32 2147483648, %v441_v53  ;;  %v429_v60 = vsel %vm405_vm8, 2139095040, %v706_v59  ;;  %vm242_vm12 = vcmp.eq.f32.partialorder %v801_v28, 8.507059e+37 }
  0x2a   : > { %vm365_vm0 = vcmp.ge.f32.partialorder %v364_v6, 1.4142135  ;;  %v366_v7 = vmul.f32 0.5, %v364_v6  ;;  %v416_v43 = vand.u32 1, %v415_v40  ;;  %vm418_vm14 = vmneg %vm818_vm9 }
  0x2b   : > { %v369_v31 = vsel %vm365_vm0, %v368_v25, %v453_v19  ;;  %v617_v54 = vpop.eup %616  ;;  %vm852_vm5 = vmand %vm421_vm15, %vm818_vm9  ;;  %vm237_vm9 = vweird.f32 %v798_v22 }
  0x2c   : > { %v367_v8 = vsel %vm365_vm0, %v366_v7, %v364_v6  ;;  %v389_v37 = vcvt.s32.f32 %v369_v31  ;;  %vm417_vm13 = vcmp.eq.s32.totalorder %v416_v43, 1  ;;  %vm834_vm0 = vmand %vm405_vm8, %vm422_vm10  ;;  %v233_v57 = vmul.f32 %v617_v54, %v798_v22 }
  0x2d   : > { %v454_v9 = vadd.f32 -1.0, %v367_v8  ;;  %vm446_vm8 = vcmp.ne.f32.partialorder %v790_v1, %v790_v1  ;;  %v244_v6 = vor.u32 1.1754944e-38, %v243_v58 }
  0x2e   : > { %v234_v61 = vsub.f32 1.0, %v233_v57 }
  0x2f   : > { %v371_v11 = vmul.f32 %v454_v9, %v454_v9 }
  0x30   : > { %v235_v4 = vmul.f32 %v617_v54, %v234_v61 }
  0x31   : > { %v372_v12 = vmul.f32 0.12621109, %v371_v11  ;;  %v374_v13 = vmul.f32 -0.20706727, %v371_v11 }
  0x33   : > { %v373_v15 = vadd.f32 0.21545328, %v372_v12  ;;  %v375_v16 = vadd.f32 -0.23896284, %v374_v13 }
  0x35   : > { %v376_v17 = vmul.f32 %v373_v15, %v371_v11  ;;  %v378_v18 = vmul.f32 %v375_v16, %v371_v11 }
  0x37   : > { %v377_v20 = vadd.f32 0.28795174, %v376_v17  ;;  %v379_v21 = vadd.f32 -0.3607037, %v378_v18 }
  0x39   : > { %v380_v23 = vmul.f32 %v377_v20, %v371_v11  ;;  %v382_v24 = vmul.f32 %v379_v21, %v371_v11 }
  0x3b   : > { %v381_v26 = vadd.f32 0.48090908, %v380_v23  ;;  %v383_v27 = vadd.f32 -0.72134733, %v382_v24  ;;  %v210_v24 = vld [vmem:[#allocation2] sm:$0xf] }
  0x3d   : > { %v384_v29 = vmul.f32 %v381_v26, %v371_v11  ;;  %v386_v30 = vmul.f32 %v454_v9, %v383_v27 }
  0x3f   : > { %v385_v34 = vadd.f32 1.442695, %v384_v29 }
  0x41   : > { %v387_v36 = vadd.f32 %v386_v30, %v385_v34 }
  0x43   : > { %v388_v39 = vmul.f32 %v454_v9, %v387_v36  ;;  %v236_v9 = vadd.f32 %v617_v54, %v235_v4 }
  0x45   : > { %v390_v41 = vadd.f32 %v389_v37, %v388_v39 }
  0x47   : > { %v395_v42 = vsel %vm394_vm2, %v793_v2, %v390_v41  ;;  %vm412_vm2 = vcmp.lt.f32.partialorder %v801_v28, 1266679808 }
  0x48   : > { %v396_v44 = vsel %vm393_vm3, nan, %v395_v42  ;;  %vm419_vm3 = vmand %vm417_vm13, %vm418_vm14  ;;  %vm238_vm13 = vweird.f32 %v617_v54  ;;  %vm403_vm14 = vcmp.eq.f32.partialorder %v798_v22, 0 }
  0x49   : > { %v397_v46 = vsel %vm392_vm6, -inf, %v396_v44  ;;  %vm436_vm6 = vmor %vm834_vm0, %vm840_vm1  ;;  %vm438_vm0 = vcmp.eq.f32.partialorder %v790_v1, 3212836864  ;;  %vm423_vm1 = vcmp.eq.f32.partialorder %v790_v1, 1065353216 }
  0x4a   : > { %v398_v47 = vsel %vm391_vm7, 0.0, %v397_v46  ;;  %vm420_vm7 = vmand %vm412_vm2, %vm419_vm3  ;;  %v437_v63 = vsel %vm436_vm6, 2139095040, %v706_v59  ;;  %vm447_vm3 = vcmp.ne.f32.partialorder %v798_v22, %v798_v22 }
  0x4b   : > { %v399_v48 = vmul.f32 %v398_v47, %v798_v22  ;;  %vm431_vm2 = vmand %vm424_vm11, %vm420_vm7  ;;  %v443_v3 = vsel %vm420_vm7, %v442_v56, %v441_v53  ;;  %v439_v8 = vsel %vm438_vm0, 1065353216, %v437_v63  ;;  %vm404_vm11 = vcmp.eq.f32.partialorder %v798_v22, 1065353216 }
  0x4c   : > { %vm239_vm6 = vmor %vm237_vm9, %vm238_vm13  ;;  %v444_v10 = vsel %vm421_vm15, %v443_v3, %v441_v53  ;;  %vm217_vm15 = vcmask 1043456  }
  0x4d   : > { %618 = vpow2.f32 %v399_v48  ;;  %v240_v12 = vsel %vm239_vm6, %v617_v54, %v236_v9  ;;  %vm450_vm7 = vmor %vm423_vm1, %vm403_vm14 }
  0x4e   : > { %v245_v14 = vsel %vm242_vm12, %v244_v6, %v240_v12 }
  0x4f   : > { %455 = vpush %v245_v14 }
  0x53   : > { %v619_v62 = vpop.eup %618 }
  0x54   : > { %v428_v0 = vsel %vm852_vm5, 2143289344, %v619_v62  ;;  %vm426_vm5 = vcmp.eq.f32.partialorder %v793_v2, 2139095040 }
  0x55   : > { %v430_v5 = vsel %vm422_vm10, %v429_v60, %v428_v0  ;;  %vm448_vm10 = vmor %vm446_vm8, %vm447_vm3 }
  0x56   : > { %v432_v7 = vxor.u32 2147483648, %v430_v5 }
  0x58   : > { %v433_v11 = vsel %vm431_vm2, %v432_v7, %v430_v5 }
  0x59   : > { %v440_v13 = vsel %vm402_vm4, %v439_v8, %v433_v11  ;;  %vm1013_vm4 = vcmask 3072  }
  0x5a   : > { %v445_v15 = vsel %vm426_vm5, %v444_v10, %v440_v13 }
  0x5b   : > { %v449_v2 = vsel %vm448_vm10, 2143289344, %v445_v15 }
  0x5c   : > { %v451_v16 = vsel %vm450_vm7, 1065353216, %v449_v2 }
  0x5d   : > { %v452_v17 = vsel %vm404_vm11, %v790_v1, %v451_v16 }
  0x5e   : > { %212 = vst [vmem:[#allocation1] ss:$2 sm:$0xff] %v452_v17 }
  0x65   : > { %v213_v18 = vld.sshfl [vmem:[#allocation1] sm:$0xff pattern:$0x75316420]  ;;  %v214_v19 = vld.sshfl [vmem:[#allocation1 + $0x8] sm:$0xff pattern:$0x75316420] }
  0x66   : > { %v218_v20 = vsel %vm217_vm15, %v213_v18, 0.0  ;;  %v219_v21 = vsel %vm217_vm15, %v214_v19, 0.0 }
  0x67   : > { %v220_v23 = vadd.f32 %v219_v21, %v218_v20 }
  0x69   : > { %221 = vadd.xlane.f32.xlu0 %v220_v23 }
  0x80   : > { %s456_s10 = spop %455 }
  0x81   : > { %v900_v44 = vstv %s456_s10 }
  0x82   : > { %v903_v50 = vand.u32 2147483647, %v900_v44  ;;  %v510_v56 = vceil.f32 %v900_v44  ;;  %v511_v57 = vfloor.f32 %v900_v44  ;;  %vm509_vm9 = vcmp.lt.s32.totalorder %v900_v44, 0 }
  0x83   : > { %vm508_vm10 = vcmp.lt.f32.partialorder %v900_v44, 0 }
  0x84   : > { %v517_v58 = vfloor.f32 %v903_v50  ;;  %v512_v0 = vsel %vm509_vm9, %v510_v56, %v511_v57  ;;  %vm505_vm13 = vcmp.eq.f32.partialorder %v903_v50, 2139095040  ;;  %vm515_vm11 = vcmp.lt.f32.partialorder %v903_v50, 1266679808 }
  0x85   : > { %vm513_vm14 = vcmp.ne.f32.partialorder %v900_v44, %v512_v0  ;;  %v544_v15 = vsel %vm508_vm10, 0, %v705_v52  ;;  %v532_v18 = vsel %vm508_vm10, 2139095040, %v706_v59 }
  0x86   : > { %v518_v3 = vcvt.f32.s32 %v517_v58  ;;  %vm917_vm2 = vmor %vm513_vm14, %vm505_vm13  ;;  %v545_v16 = vxor.u32 2147483648, %v544_v15 }
  0x87   : > { %vm521_vm5 = vmneg %vm917_vm2 }
  0x88   : > { %v519_v7 = vand.u32 1, %v518_v3 }
  0x8a   : > { %vm520_vm6 = vcmp.eq.s32.totalorder %v519_v7, 1 }
  0x8b   : > { %vm522_vm15 = vmand %vm520_vm6, %vm521_vm5 }
  0x8c   : > { %vm940_vm9 = vmand %vm515_vm11, %vm522_vm15 }
  0x8d   : > { %v546_v23 = vsel %vm940_vm9, %v545_v16, %v544_v15 }
  0xdc   : > { %v222_v25 = vpop.xlane.xlu0 %221 }
  0xdd   : > { %v223_v26 = vadd.f32 %v222_v25, %v210_v24 }
  0xdf   : > { %225 = vst.msk [vmem:[#allocation2] sm:$0xf] %vm1013_vm4, %v223_v26 }
  0xe6   : > { %v229_v22 = vld [vmem:[#allocation2] sm:$0xf] }
  0xe7   : > { %v892_v27 = vmul.f32 0.00390625, %v229_v22 }
  0xe9   : > { %v895_v28 = vand.u32 2147483647, %v892_v27  ;;  %vm525_vm4 = vcmp.eq.f32.partialorder %v892_v27, 0  ;;  %vm524_vm14 = vcmp.lt.f32.partialorder %v892_v27, 0  ;;  %vm549_vm5 = vcmp.ne.f32.partialorder %v892_v27, %v892_v27 }
  0xea   : > { %vm526_vm11 = vcmp.eq.f32.partialorder %v892_v27, 1065353216  ;;  %v547_v26 = vsel %vm524_vm14, %v546_v23, %v544_v15 }
  0xeb   : > { %v463_v1 = vand.u32 8388607, %v895_v28  ;;  %v459_v36 = vand.u32 2139095040, %v895_v28  ;;  %vm497_vm0 = vweird.f32 %v895_v28  ;;  %vm496_vm1 = vcmp.lt.f32.partialorder %v895_v28, 0.0 }
  0xec   : > { %vm495_vm8 = vcmp.eq.f32.partialorder %v895_v28, 0.0  ;;  %vm494_vm3 = vcmp.eq.f32.partialorder %v895_v28, 1.0  ;;  %vm528_vm7 = vcmp.gt.f32.partialorder %v895_v28, 1065353216  ;;  %vm529_vm15 = vcmp.eq.f32.partialorder %v895_v28, 2139095040 }
  0xed   : > { %v464_v29 = vor.u32 8388608, %v463_v1  ;;  %v460_v41 = vshrl.u32 %v459_v36, 23 }
  0xef   : > { %v466_v30 = vand.u32 8388607, %v464_v29  ;;  %v556_v47 = vadd.s32 4294967169, %v460_v41 }
  0xf1   : > { %v467_v31 = vor.u32 1065353216, %v466_v30  ;;  %v471_v54 = vadd.s32 1, %v556_v47 }
  0xf3   : > { %vm468_vm12 = vcmp.ge.f32.partialorder %v467_v31, 1.4142135  ;;  %v469_v32 = vmul.f32 0.5, %v467_v31 }
  0xf4   : > { %v472_v62 = vsel %vm468_vm12, %v471_v54, %v556_v47 }
  0xf5   : > { %v470_v33 = vsel %vm468_vm12, %v469_v32, %v467_v31  ;;  %v492_v5 = vcvt.s32.f32 %v472_v62  ;;  %vm932_vm12 = vmxor %vm508_vm10, %vm528_vm7  ;;  %vm550_vm7 = vcmp.ne.f32.partialorder %v900_v44, %v900_v44 }
  0xf6   : > { %v557_v34 = vadd.f32 -1.0, %v470_v33 }
  0xf8   : > { %v474_v35 = vmul.f32 %v557_v34, %v557_v34 }
  0xfa   : > { %v475_v37 = vmul.f32 0.12621109, %v474_v35  ;;  %v477_v38 = vmul.f32 -0.20706727, %v474_v35 }
  0xfc   : > { %v476_v39 = vadd.f32 0.21545328, %v475_v37  ;;  %v478_v40 = vadd.f32 -0.23896284, %v477_v38 }
  0xfe   : > { %v479_v42 = vmul.f32 %v476_v39, %v474_v35  ;;  %v481_v43 = vmul.f32 %v478_v40, %v474_v35 }
 0x100   : > { %v480_v45 = vadd.f32 0.28795174, %v479_v42  ;;  %v482_v46 = vadd.f32 -0.3607037, %v481_v43 }
 0x102   : > { %v483_v48 = vmul.f32 %v480_v45, %v474_v35  ;;  %v485_v49 = vmul.f32 %v482_v46, %v474_v35 }
 0x104   : > { %v484_v51 = vadd.f32 0.48090908, %v483_v48  ;;  %v486_v53 = vadd.f32 -0.72134733, %v485_v49 }
 0x106   : > { %v487_v55 = vmul.f32 %v484_v51, %v474_v35  ;;  %v489_v61 = vmul.f32 %v557_v34, %v486_v53 }
 0x108   : > { %v488_v60 = vadd.f32 1.442695, %v487_v55 }
 0x10a   : > { %v490_v63 = vadd.f32 %v489_v61, %v488_v60 }
 0x10c   : > { %v491_v4 = vmul.f32 %v557_v34, %v490_v63 }
 0x10e   : > { %v493_v6 = vadd.f32 %v492_v5, %v491_v4 }
 0x110   : > { %v498_v8 = vsel %vm497_vm0, %v895_v28, %v493_v6  ;;  %vm537_vm0 = vmand %vm508_vm10, %vm525_vm4  ;;  %vm506_vm10 = vcmp.eq.f32.partialorder %v900_v44, 0 }
 0x111   : > { %v499_v10 = vsel %vm496_vm1, nan, %v498_v8  ;;  %vm539_vm1 = vmor %vm537_vm0, %vm932_vm12  ;;  %vm1020_vm0 = vcmask 3072  }
 0x112   : > { %v500_v11 = vsel %vm495_vm8, -inf, %v499_v10  ;;  %vm530_vm8 = vmand %vm524_vm14, %vm917_vm2  ;;  %v540_v20 = vsel %vm539_vm1, 2139095040, %v706_v59  ;;  %vm541_vm2 = vcmp.eq.f32.partialorder %v892_v27, 3212836864 }
 0x113   : > { %v501_v12 = vsel %vm494_vm3, 0.0, %v500_v11  ;;  %vm527_vm3 = vcmp.lt.s32.totalorder %v892_v27, 0  ;;  %v542_v24 = vsel %vm541_vm2, 1065353216, %v540_v20  ;;  %vm553_vm12 = vmor %vm526_vm11, %vm506_vm10 }
 0x114   : > { %v502_v13 = vmul.f32 %v501_v12, %v900_v44  ;;  %vm534_vm6 = vmand %vm527_vm3, %vm940_vm9  ;;  %vm507_vm9 = vcmp.eq.f32.partialorder %v900_v44, 1065353216 }
 0x116   : > { %620 = vpow2.f32 %v502_v13 }
 0x11c   : > { %v621_v17 = vpop.eup %620 }
 0x11d   : > { %v531_v52 = vsel %vm530_vm8, 2143289344, %v621_v17 }
 0x11e   : > { %v533_v19 = vsel %vm525_vm4, %v532_v18, %v531_v52  ;;  %vm551_vm4 = vmor %vm549_vm5, %vm550_vm7 }
 0x11f   : > { %v535_v21 = vxor.u32 2147483648, %v533_v19 }
 0x121   : > { %v536_v59 = vsel %vm534_vm6, %v535_v21, %v533_v19 }
 0x122   : > { %v543_v25 = vsel %vm505_vm13, %v542_v24, %v536_v59 }
 0x123   : > { %v548_v22 = vsel %vm529_vm15, %v547_v26, %v543_v25 }
 0x124   : > { %v552_v1 = vsel %vm551_vm4, 2143289344, %v548_v22 }
 0x125   : > { %v554_v29 = vsel %vm553_vm12, 1065353216, %v552_v1 }
 0x126   : > { %v555_v30 = vsel %vm507_vm9, %v892_v27, %v554_v29 }
 0x127   : > { %249 = vst.msk [vmem:[%s198_s14] sm:$0xf] %vm1020_vm0, %v555_v30 }
 0x128 PF: > { %s16_s16 = sadd.s32 1, %s702_s16   ;;  %s1021_s11 = smov %s686_s12 }
 0x129   : > { %p13_p0 = scmp.ge.s32.totalorder %s16_s16, 4   ;;  %s1022_s12 = smov %s690_s13 }
 0x12a   : > { %s1023_s13 = smov %s774_s22  ;;  %s1024_s14 = smov %s698_s15 }
 0x12b   : > { %s1025_s15 = smov %s1027_s17  ;;  %15 = sbr.rel (!%p13_p0) target bundleno = 6 (0x6), region = 76 }
 0x130   :  { %275 = vsyncpa [#allocation5], 1 }
 0x131   :  { %277 = vsyncpa [#allocation5 + $0x1], 1 }

</bundles_post_ra>
